<compile_context>
chip_gen: v6e
topology: v6e:2x2x1
jax: 0.10.0
libtpu: 0.0.40
codegen_flags: <defaults>
</compile_context>

<pallas_src>
import functools

import jax
import jax.numpy as jnp
import numpy as np
from jax import lax
from jax.experimental import pallas as pl
from jax.experimental.pallas import tpu as pltpu

SIGMA = 0.1
EPS = 1e-6
# Computed in __init__ of the module; not used in the visible forward pass.
BETA = 2 ** 0.5 * 3.1415926 ** 2 * SIGMA / 8.0
ALPHA = 1.0 / ((2 * 3.1415926) ** 0.5 * SIGMA)


def _qualifier_kernel(x_ref, img_ref, stats_ref, cs_ref, css_ref,
                      *, wq, hq, n_strips):
    # Grid: (qr, bc_chunk, h_chunk). h_chunk (last) is the reduction axis.
    #   x_ref:     (2, TBC, Wq)  weights for the two column quadrants (qc=0,1).
    #                            Its index_map is k-invariant, so reading it in
    #                            the finalize (last k) block is valid.
    #   img_ref:   (TBC, TH, W)  full-width slab of the qr-th row quadrant.
    #   stats_ref: (TBC, 4)      [mean_left, mean_right, std_left, std_right]
    #   cs_ref / css_ref: (TBC, W) running column sums of img and img^2 (f32).
    k = pl.program_id(2)

    @pl.when(k == 0)
    def _init():
        cs_ref[...] = jnp.zeros_like(cs_ref)
        css_ref[...] = jnp.zeros_like(css_ref)

    # Hot loop: pure-VPU row reduction accumulated in 8-sublane strips, so the
    # slab-sized img*img temporary is never materialized (live VMEM stays at
    # ~one strip beyond the streaming slab).
    def _strip(s, carry):
        row0 = pl.multiple_of(s * 8, 8)
        blk = img_ref[:, pl.ds(row0, 8), :].astype(jnp.float32)   # (TBC, 8, W)
        cs_ref[...] += jnp.sum(blk, axis=1)
        css_ref[...] += jnp.sum(blk * blk, axis=1)
        return carry

    lax.fori_loop(0, n_strips, _strip, 0, unroll=(n_strips <= 4))

    @pl.when(k == pl.num_programs(2) - 1)
    def _finalize():
        x = x_ref[...].astype(jnp.float32)        # (2, TBC, Wq)
        xl, xr = x[0], x[1]
        colsum = cs_ref[...]
        colsumsq = css_ref[...]

        def _stats(xw, cs, css):
            d0 = jnp.sum(xw, axis=-1, keepdims=True)            # sum_w x
            denom = d0 + EPS
            s1 = jnp.sum(xw * cs, axis=-1, keepdims=True)       # sum x*img
            s2 = jnp.sum(xw * css, axis=-1, keepdims=True)      # sum x*img^2
            mean = s1 / denom
            # sum_{h,w} x*(img-mean)^2 = s2 - 2*mean*s1 + Hq*mean^2*d0
            # (x broadcasts over the Hq quadrant rows; matches the reference
            #  whose denominator sums x over W only).
            num = s2 - 2.0 * mean * s1 + float(hq) * mean * mean * d0
            std = jnp.sqrt(jnp.maximum(num, 0.0) / denom)
            return mean, std

        m_l, s_l = _stats(xl, colsum[:, :wq], colsumsq[:, :wq])
        m_r, s_r = _stats(xr, colsum[:, wq:], colsumsq[:, wq:])
        stats_ref[...] = jnp.concatenate([m_l, m_r, s_l, s_r],
                                         axis=-1).astype(stats_ref.dtype)


def _mult8_divisors(n):
    return [d for d in range(8, n + 1, 8) if n % d == 0]


def qualifier_mask(x, img, *, tile_bytes=6 * 1024 * 1024):
    """x: (B, C, 4, W//2), img: (B, C, H, W) NCHW (f32 or bf16).

    Returns (mean, std, lower, upper), each of shape (4, B, C) float32.
    """
    B, C, H, W = img.shape
    assert H % 2 == 0 and W % 2 == 0, "even spatial dims required"
    Hq, Wq = H // 2, W // 2
    assert x.shape == (B, C, 4, Wq)
    BC = B * C
    assert Hq % 8 == 0, "quadrant height must be a multiple of 8 (pad otherwise)"

    # ---- tile selection: maximize th first (long contiguous DMA segments,
    # fewer reduction steps), then grow tbc to fill the slab budget.
    bc_cands = _mult8_divisors(BC) or [BC]   # TBC mult. of 8 or == BC
    tbc_min = min(bc_cands)
    h_cands = _mult8_divisors(Hq)            # 8 | Hq guaranteed above
    isz = 4                                   # budget in f32 terms
    fit_h = [t for t in h_cands if tbc_min * t * W * isz <= tile_bytes]
    th = max(fit_h) if fit_h else min(h_cands)
    fit_bc = [d for d in bc_cands if d * th * W * isz <= tile_bytes]
    tbc = max(fit_bc) if fit_bc else tbc_min

    # ---- free reshapes only; no HBM copy of img
    img_flat = img.reshape(BC, H, W)
    # quadrant i = 2*qr + qc; x is tiny so this re-layout is negligible.
    x_q = jnp.transpose(x.reshape(BC, 2, 2, Wq), (1, 2, 0, 3))   # (2,2,BC,Wq)

    n_hblk = Hq // th
    grid = (2, BC // tbc, n_hblk)

    kern = functools.partial(_qualifier_kernel, wq=Wq, hq=Hq, n_strips=th // 8)

    slab_bytes = tbc * th * W * isz
    vmem_limit = min(max(4 * slab_bytes + (8 << 20), 32 << 20), 56 << 20)

    cost = pl.CostEstimate(
        flops=3 * B * C * H * W,
        bytes_accessed=(img.size * img.dtype.itemsize
                        + x.size * x.dtype.itemsize + 4 * BC * 4 * 2),
        transcendentals=8 * B * C,
    )

    stats = pl.pallas_call(
        kern,
        grid=grid,
        in_specs=[
            pl.BlockSpec((None, 2, tbc, Wq), lambda qr, j, k: (qr, 0, j, 0)),
            pl.BlockSpec((tbc, th, W),
                         lambda qr, j, k: (j, qr * n_hblk + k, 0)),
        ],
        out_specs=pl.BlockSpec((None, tbc, 4), lambda qr, j, k: (qr, j, 0)),
        out_shape=jax.ShapeDtypeStruct((2, BC, 4), jnp.float32),
        scratch_shapes=[pltpu.VMEM((tbc, W), jnp.float32),
                        pltpu.VMEM((tbc, W), jnp.float32)],
        compiler_params=pltpu.CompilerParams(
            dimension_semantics=("parallel", "parallel", "arbitrary"),
            vmem_limit_bytes=vmem_limit),
        cost_estimate=cost,
    )(x_q, img_flat)

    # stats: (qr, bc, [mean_l, mean_r, std_l, std_r])
    mean = jnp.transpose(stats[..., 0:2], (0, 2, 1)).reshape(4, B, C)
    std = jnp.transpose(stats[..., 2:4], (0, 2, 1)).reshape(4, B, C)
    # lower/upper are trivial elementwise ops on (4, B, C); keep out of kernel.
    return mean, std, mean - std, mean + std


def _reference(x, img):
    """Pure-JAX reference mirroring the PyTorch forward (two-pass variance)."""
    B, C, H, W = img.shape
    Hq, Wq = H // 2, W // 2
    quads = [img[:, :, :Hq, :Wq], img[:, :, :Hq, Wq:],
             img[:, :, Hq:, :Wq], img[:, :, Hq:, Wq:]]
    means, stds, lowers, uppers = [], [], [], []
    for i in range(4):
        xi = x[:, :, i:i + 1, :]                                  # (B,C,1,Wq)
        denom = jnp.sum(xi, axis=(2, 3)) + EPS                    # (B,C)
        m = jnp.sum(xi * quads[i], axis=(2, 3)) / denom
        d = quads[i] - m[:, :, None, None]
        s = jnp.sqrt(jnp.sum(xi * d * d, axis=(2, 3)) / denom)
        means.append(m); stds.append(s)
        lowers.append(m - s); uppers.append(m + s)
    return (jnp.stack(means), jnp.stack(stds),
            jnp.stack(lowers), jnp.stack(uppers))


def _check(outs, refs):
    for got, want in zip(outs, refs):
        np.testing.assert_allclose(np.asarray(got), np.asarray(want),
                                   rtol=1e-4, atol=1e-5)


if __name__ == "__main__":
    key = jax.random.PRNGKey(0)
    k1, k2, k3, k4 = jax.random.split(key, 4)

    # Test 1: small shape, single-step reduction, single strip.
    B, C, H, W = 2, 4, 16, 16
    img = jax.random.normal(k1, (B, C, H, W), dtype=jnp.float32)
    x = jax.random.uniform(k2, (B, C, 4, W // 2), dtype=jnp.float32)
    outs = jax.block_until_ready(qualifier_mask(x, img))
    _check(outs, _reference(x, img))

    # Test 2: tiny tile budget -> multiple B*C chunks and multiple H-reduction
    # grid steps (exercises the scratch accumulator init/finalize path).
    B, C, H, W = 2, 8, 64, 32
    img = jax.random.normal(k3, (B, C, H, W), dtype=jnp.float32)
    x = jax.random.uniform(k4, (B, C, 4, W // 2), dtype=jnp.float32)
    outs = jax.block_until_ready(qualifier_mask(x, img, tile_bytes=8 * 1024))
    _check(outs, _reference(x, img))

    # Test 3: same data, default budget -> full-quadrant tile with several
    # 8-row strips inside one grid step (exercises the in-kernel strip loop).
    outs = jax.block_until_ready(qualifier_mask(x, img))
    _check(outs, _reference(x, img))

    print("KERNEL_OK")
</pallas_src>

<mosaic_0001>
module attributes {stable_mosaic.version = 11 : i64} {
  func.func @_qualifier_kernel(%arg0: i32, %arg1: i32, %arg2: i32, %arg3: memref<1x2x8x8xf32, #tpu.memory_space<vmem>>, %arg4: memref<8x8x16xf32, #tpu.memory_space<vmem>>, %arg5: memref<1x8x4xf32, #tpu.memory_space<vmem>>, %arg6: memref<8x16xf32, #tpu.memory_space<vmem>>, %arg7: memref<8x16xf32, #tpu.memory_space<vmem>>) attributes {dimension_semantics = [#tpu.dimension_semantics<parallel>, #tpu.dimension_semantics<parallel>, #tpu.dimension_semantics<arbitrary>], iteration_bounds = array<i64: 2, 1, 1>, scalar_prefetch = 0 : i64, scratch_operands = 2 : i64, tpu.core_type = #tpu.core_type<tc>, window_params = [{transform_indices = @transform_0, window_bounds = array<i64: 1, 2, 8, 8>}, {transform_indices = @transform_1, window_bounds = array<i64: 8, 8, 16>}, {transform_indices = @transform_2, window_bounds = array<i64: 1, 8, 4>}]} {
    %c0_i32 = arith.constant 0 : i32
    %0 = arith.cmpi eq, %arg2, %c0_i32 : i32
    %1 = arith.extui %0 : i1 to i32
    %c0_i32_0 = arith.constant 0 : i32
    %2 = arith.cmpi ne, %1, %c0_i32_0 : i32
    scf.if %2 {
      %cst_14 = arith.constant 0.000000e+00 : f32
      %19 = vector.broadcast %cst_14 : f32 to vector<8x16xf32>
      %c0_15 = arith.constant 0 : index
      %c0_16 = arith.constant 0 : index
      %20 = vector.load %arg6[%c0_15, %c0_16] : memref<8x16xf32, #tpu.memory_space<vmem>>, vector<8x16xf32>
      tpu.vector_store %arg6[%c0_15, %c0_16], %19 {strides = array<i32>} : memref<8x16xf32, #tpu.memory_space<vmem>>, vector<8x16xf32>,
      %cst_17 = arith.constant 0.000000e+00 : f32
      %21 = vector.broadcast %cst_17 : f32 to vector<8x16xf32>
      %c0_18 = arith.constant 0 : index
      %c0_19 = arith.constant 0 : index
      %22 = vector.load %arg7[%c0_18, %c0_19] : memref<8x16xf32, #tpu.memory_space<vmem>>, vector<8x16xf32>
      tpu.vector_store %arg7[%c0_18, %c0_19], %21 {strides = array<i32>} : memref<8x16xf32, #tpu.memory_space<vmem>>, vector<8x16xf32>,
    } else {
    }
    %c0_i32_1 = arith.constant 0 : i32
    %c8_i32 = arith.constant 8 : i32
    %3 = arith.muli %c0_i32_1, %c8_i32 : i32
    %4 = tpu.assume_multiple %3, 8 : i32
    %c0 = arith.constant 0 : index
    %5 = arith.index_cast %4 : i32 to index
    %c0_2 = arith.constant 0 : index
    %6 = vector.load %arg4[%c0, %5, %c0_2] : memref<8x8x16xf32, #tpu.memory_space<vmem>>, vector<8x8x16xf32>
    %c0_3 = arith.constant 0 : index
    %c0_4 = arith.constant 0 : index
    %7 = vector.load %arg6[%c0_3, %c0_4] : memref<8x16xf32, #tpu.memory_space<vmem>>, vector<8x16xf32>
    %cst = arith.constant dense<0.000000e+00> : vector<8x16xf32>
    %8 = vector.multi_reduction <add>, %6, %cst [1] : vector<8x8x16xf32> to vector<8x16xf32>
    %9 = arith.addf %7, %8 : vector<8x16xf32>
    %c0_5 = arith.constant 0 : index
    %c0_6 = arith.constant 0 : index
    %10 = vector.load %arg6[%c0_5, %c0_6] : memref<8x16xf32, #tpu.memory_space<vmem>>, vector<8x16xf32>
    tpu.vector_store %arg6[%c0_5, %c0_6], %9 {strides = array<i32>} : memref<8x16xf32, #tpu.memory_space<vmem>>, vector<8x16xf32>,
    %c0_7 = arith.constant 0 : index
    %c0_8 = arith.constant 0 : index
    %11 = vector.load %arg7[%c0_7, %c0_8] : memref<8x16xf32, #tpu.memory_space<vmem>>, vector<8x16xf32>
    %12 = arith.mulf %6, %6 : vector<8x8x16xf32>
    %cst_9 = arith.constant dense<0.000000e+00> : vector<8x16xf32>
    %13 = vector.multi_reduction <add>, %12, %cst_9 [1] : vector<8x8x16xf32> to vector<8x16xf32>
    %14 = arith.addf %11, %13 : vector<8x16xf32>
    %c0_10 = arith.constant 0 : index
    %c0_11 = arith.constant 0 : index
    %15 = vector.load %arg7[%c0_10, %c0_11] : memref<8x16xf32, #tpu.memory_space<vmem>>, vector<8x16xf32>
    tpu.vector_store %arg7[%c0_10, %c0_11], %14 {strides = array<i32>} : memref<8x16xf32, #tpu.memory_space<vmem>>, vector<8x16xf32>,
    %c1_i32 = arith.constant 1 : i32
    %c0_i32_12 = arith.constant 0 : i32
    %16 = arith.cmpi eq, %arg2, %c0_i32_12 : i32
    %17 = arith.extui %16 : i1 to i32
    %c0_i32_13 = arith.constant 0 : i32
    %18 = arith.cmpi ne, %17, %c0_i32_13 : i32
    scf.if %18 {
      %c0_14 = arith.constant 0 : index
      %c0_15 = arith.constant 0 : index
      %c0_16 = arith.constant 0 : index
      %c0_17 = arith.constant 0 : index
      %19 = vector.load %arg3[%c0_14, %c0_15, %c0_16, %c0_17] : memref<1x2x8x8xf32, #tpu.memory_space<vmem>>, vector<1x2x8x8xf32>
      %20 = vector.shape_cast %19 : vector<1x2x8x8xf32> to vector<2x8x8xf32>
      %21 = vector.extract_strided_slice %20 {offsets = [0, 0, 0], sizes = [1, 8, 8], strides = [1, 1, 1]} : vector<2x8x8xf32> to vector<1x8x8xf32>
      %22 = vector.shape_cast %21 : vector<1x8x8xf32> to vector<8x8xf32>
      %23 = vector.extract_strided_slice %20 {offsets = [1, 0, 0], sizes = [1, 8, 8], strides = [1, 1, 1]} : vector<2x8x8xf32> to vector<1x8x8xf32>
      %24 = vector.shape_cast %23 : vector<1x8x8xf32> to vector<8x8xf32>
      %c0_18 = arith.constant 0 : index
      %c0_19 = arith.constant 0 : index
      %25 = vector.load %arg6[%c0_18, %c0_19] : memref<8x16xf32, #tpu.memory_space<vmem>>, vector<8x16xf32>
      %c0_20 = arith.constant 0 : index
      %c0_21 = arith.constant 0 : index
      %26 = vector.load %arg7[%c0_20, %c0_21] : memref<8x16xf32, #tpu.memory_space<vmem>>, vector<8x16xf32>
      %27 = vector.extract_strided_slice %25 {offsets = [0, 0], sizes = [8, 8], strides = [1, 1]} : vector<8x16xf32> to vector<8x8xf32>
      %28 = vector.extract_strided_slice %26 {offsets = [0, 0], sizes = [8, 8], strides = [1, 1]} : vector<8x16xf32> to vector<8x8xf32>
      %cst_22 = arith.constant dense<0.000000e+00> : vector<8xf32>
      %29 = vector.multi_reduction <add>, %22, %cst_22 [1] : vector<8x8xf32> to vector<8xf32>
      %30 = vector.shape_cast %29 : vector<8xf32> to vector<8x1xf32>
      %cst_23 = arith.constant 9.99999997E-7 : f32
      %31 = vector.broadcast %cst_23 : f32 to vector<8x1xf32>
      %32 = arith.addf %30, %31 : vector<8x1xf32>
      %33 = arith.mulf %22, %27 : vector<8x8xf32>
      %cst_24 = arith.constant dense<0.000000e+00> : vector<8xf32>
      %34 = vector.multi_reduction <add>, %33, %cst_24 [1] : vector<8x8xf32> to vector<8xf32>
      %35 = vector.shape_cast %34 : vector<8xf32> to vector<8x1xf32>
      %36 = arith.mulf %22, %28 : vector<8x8xf32>
      %cst_25 = arith.constant dense<0.000000e+00> : vector<8xf32>
      %37 = vector.multi_reduction <add>, %36, %cst_25 [1] : vector<8x8xf32> to vector<8xf32>
      %38 = vector.shape_cast %37 : vector<8xf32> to vector<8x1xf32>
      %39 = arith.divf %35, %32 : vector<8x1xf32>
      %cst_26 = arith.constant 2.000000e+00 : f32
      %40 = vector.broadcast %cst_26 : f32 to vector<8x1xf32>
      %41 = arith.mulf %40, %39 : vector<8x1xf32>
      %42 = arith.mulf %41, %35 : vector<8x1xf32>
      %43 = arith.subf %38, %42 : vector<8x1xf32>
      %cst_27 = arith.constant 8.000000e+00 : f32
      %44 = vector.broadcast %cst_27 : f32 to vector<8x1xf32>
      %45 = arith.mulf %44, %39 : vector<8x1xf32>
      %46 = arith.mulf %45, %39 : vector<8x1xf32>
      %47 = arith.mulf %46, %30 : vector<8x1xf32>
      %48 = arith.addf %43, %47 : vector<8x1xf32>
      %cst_28 = arith.constant 0.000000e+00 : f32
      %49 = vector.broadcast %cst_28 : f32 to vector<8x1xf32>
      %50 = arith.maximumf %48, %49 : vector<8x1xf32>
      %51 = arith.divf %50, %32 : vector<8x1xf32>
      %52 = math.sqrt %51 : vector<8x1xf32>
      %53 = vector.extract_strided_slice %25 {offsets = [0, 8], sizes = [8, 8], strides = [1, 1]} : vector<8x16xf32> to vector<8x8xf32>
      %54 = vector.extract_strided_slice %26 {offsets = [0, 8], sizes = [8, 8], strides = [1, 1]} : vector<8x16xf32> to vector<8x8xf32>
      %cst_29 = arith.constant dense<0.000000e+00> : vector<8xf32>
      %55 = vector.multi_reduction <add>, %24, %cst_29 [1] : vector<8x8xf32> to vector<8xf32>
      %56 = vector.shape_cast %55 : vector<8xf32> to vector<8x1xf32>
      %cst_30 = arith.constant 9.99999997E-7 : f32
      %57 = vector.broadcast %cst_30 : f32 to vector<8x1xf32>
      %58 = arith.addf %56, %57 : vector<8x1xf32>
      %59 = arith.mulf %24, %53 : vector<8x8xf32>
      %cst_31 = arith.constant dense<0.000000e+00> : vector<8xf32>
      %60 = vector.multi_reduction <add>, %59, %cst_31 [1] : vector<8x8xf32> to vector<8xf32>
      %61 = vector.shape_cast %60 : vector<8xf32> to vector<8x1xf32>
      %62 = arith.mulf %24, %54 : vector<8x8xf32>
      %cst_32 = arith.constant dense<0.000000e+00> : vector<8xf32>
      %63 = vector.multi_reduction <add>, %62, %cst_32 [1] : vector<8x8xf32> to vector<8xf32>
      %64 = vector.shape_cast %63 : vector<8xf32> to vector<8x1xf32>
      %65 = arith.divf %61, %58 : vector<8x1xf32>
      %cst_33 = arith.constant 2.000000e+00 : f32
      %66 = vector.broadcast %cst_33 : f32 to vector<8x1xf32>
      %67 = arith.mulf %66, %65 : vector<8x1xf32>
      %68 = arith.mulf %67, %61 : vector<8x1xf32>
      %69 = arith.subf %64, %68 : vector<8x1xf32>
      %cst_34 = arith.constant 8.000000e+00 : f32
      %70 = vector.broadcast %cst_34 : f32 to vector<8x1xf32>
      %71 = arith.mulf %70, %65 : vector<8x1xf32>
      %72 = arith.mulf %71, %65 : vector<8x1xf32>
      %73 = arith.mulf %72, %56 : vector<8x1xf32>
      %74 = arith.addf %69, %73 : vector<8x1xf32>
      %cst_35 = arith.constant 0.000000e+00 : f32
      %75 = vector.broadcast %cst_35 : f32 to vector<8x1xf32>
      %76 = arith.maximumf %74, %75 : vector<8x1xf32>
      %77 = arith.divf %76, %58 : vector<8x1xf32>
      %78 = math.sqrt %77 : vector<8x1xf32>
      %79 = tpu.concatenate %39, %65, %52, %78 in 1 : vector<8x1xf32>, vector<8x1xf32>, vector<8x1xf32>, vector<8x1xf32> -> vector<8x4xf32>
      %c0_36 = arith.constant 0 : index
      %c0_37 = arith.constant 0 : index
      %c0_38 = arith.constant 0 : index
      %80 = vector.load %arg5[%c0_36, %c0_37, %c0_38] : memref<1x8x4xf32, #tpu.memory_space<vmem>>, vector<1x8x4xf32>
      %81 = vector.shape_cast %80 : vector<1x8x4xf32> to vector<8x4xf32>
      %82 = vector.shape_cast %79 : vector<8x4xf32> to vector<1x8x4xf32>
      tpu.vector_store %arg5[%c0_36, %c0_37, %c0_38], %82 {strides = array<i32>} : memref<1x8x4xf32, #tpu.memory_space<vmem>>, vector<1x8x4xf32>,
    } else {
    }
    return
  }
  func.func @transform_0(%arg0: i32, %arg1: i32, %arg2: i32) -> (i32, i32, i32, i32) {
    %c0_i32 = arith.constant 0 : i32
    %c0_i32_0 = arith.constant 0 : i32
    %c0_i32_1 = arith.constant 0 : i32
    return %arg0, %c0_i32, %arg1, %c0_i32_0 : i32, i32, i32, i32
  }
  func.func @transform_1(%arg0: i32, %arg1: i32, %arg2: i32) -> (i32, i32, i32) {
    %c1_i32 = arith.constant 1 : i32
    %0 = arith.muli %arg0, %c1_i32 : i32
    %1 = arith.addi %0, %arg2 : i32
    %c0_i32 = arith.constant 0 : i32
    %c0_i32_0 = arith.constant 0 : i32
    return %arg1, %1, %c0_i32 : i32, i32, i32
  }
  func.func @transform_2(%arg0: i32, %arg1: i32, %arg2: i32) -> (i32, i32, i32) {
    %c0_i32 = arith.constant 0 : i32
    %c0_i32_0 = arith.constant 0 : i32
    return %arg0, %arg1, %c0_i32 : i32, i32, i32
  }
}

</mosaic_0001>

<bundles_post_ra>
// kernel: tpu_custom_call.1
= control target key start
LH: loop header
LB: loop body
LE: loop exit
PB: predicated region body
PF: predicated region fallthrough
CT: control target
= control target key end

     0   :  { %7 = vsyncpa [#allocation5], 0  ;;  %s1052_s0 = inlined_call_operand.hbm [shape: f32[2,2,8,8], index: 0, kind: input, shape index: {}]   ;;  %s1053_s1 = inlined_call_operand.hbm [shape: f32[8,16,16], index: 1, kind: input, shape index: {}]   ;;  %s1054_s2 = inlined_call_operand.vmem [shape: f32[2,8,4], index: 2, kind: output, shape index: {}]  }
   0x1   :  { %9 = vsyncpa [#allocation5 + $0x1], 0 }
   0x2   :  { %10 = vsyncpa [#allocation7], 0 }
   0x3   :  { %12 = vsyncpa [#allocation7 + $0x1], 0  ;;  %s843_s9 = smov 0   ;;  %s845_s10 = smov 0  }
   0x4   :  { %s847_s11 = smov 0   ;;  %s849_s12 = smov 0  }
   0x5   :  { %s851_s13 = smov 0   ;;  %s853_s14 = smov 0  }
   0x6 LB: > { %s620_s15 = sadd.s32 4294967295, %s819_s14   ;;  %s37_s16 = sadd.s32 1, %s815_s13  ;;  %s819_s14 = sphi %s853_s14, %s18_s14   ;;  %s815_s13 = sphi %s851_s13, %s1063_s13   ;;  %s811_s12 = sphi %s849_s12, %s1062_s12   ;;  %s807_s11 = sphi %s847_s11, %s1061_s11   ;;  %s803_s10 = sphi %s845_s10, %s1060_s10   ;;  %s799_s9 = sphi %s843_s9, %s1059_s9  }
   0x7   : > { %p39_p0 = scmp.ge.s32.totalorder %s37_s16, 2  ;;  %s46_s17 = sadd.s32 1, %s807_s11 }
   0x8   : > { %p53_p1 = scmp.ne.s32.totalorder %s807_s11, %s803_s10  ;;  %p54_p2 = scmp.eq.s32.totalorder %s819_s14, 0 }
   0x9   : > { %s1065_s16 = smov (%p39_p0, %s37_s16), 0  ;;  %p59_p4 = scmp.ne.s32.totalorder %s803_s10, %s799_s9 }
   0xa   : > { %p879_p3 = por %p54_p2, %p53_p1  ;;  %s41_s19 = ssub.s32 %s815_s13, %s1065_s16 }
   0xb   : > { %p60_p5 = scmp.eq.s32.totalorder %s620_s15, 0  ;;  %p44_p6 = scmp.eq.s32.totalorder %s41_s19, 0 }
   0xc   : > { %p647_p8 = scmp.lt.s32.totalorder %s819_s14, 2  ;;  %s895_s22 = sand.u32 1, %s807_s11  }
   0xd   : > { %p886_p7 = por %p60_p5, %p59_p4  ;;  %s635_s23 = sshll.u32 %s815_s13, 8 }
   0xe   : > { %s892_s21 = scalar_select %p44_p6, %s807_s11, %s46_s17  }
   0xf   : > { %s624_s24 = sshll.u32 %s895_s22, 4  ;;  %s152_s27 = scalar_lea.hbm %s1052_s0, %s635_s23 }
  0x10   : > { %s145_s28 = scalar_lea.vmem [#allocation4], %s624_s24  ;;  %p904_p9 = pnand %p647_p8, %p879_p3 }
  0x11   : > { %s153_s29 = sshll.u32 %s145_s28, 4  ;;  %s142_s3 = scalar_lea.sflag [#allocation5], %s895_s22  ;;  %s154_s29 = int_to_ptr.vmem [resolvable:$true] %s153_s29 }
  0x12   : > { %p711_p10 = pneg %p904_p9  ;;  %s722_s4 = scalar_lea.vmem %s154_s29, 256 }
  0x13   : > { %p723_p11 = scmp.ne.s32.totalorder %s154_s29, %s722_s4  ;;  %s821_s5 = smov [#allocation4]  }
  0x14   : > { %s727_s6 = sshll.u32 %s821_s5, 4  ;;  %s728_s6 = int_to_ptr.vmem [resolvable:$false] %s727_s6 }
  0x15   : > { %p725_p12 = pnand %p723_p11, %p711_p10  ;;  %s729_s7 = scalar_lea.vmem %s728_s6, 512 }
  0x16   : > { %p730_p0 = scmp.lt.s32.totalorder %s154_s29, %s728_s6  ;;  %p731_p1 = scmp.lt.s32.totalorder %s729_s7, %s722_s4 }
  0x17   : > { %p726_p13 = pneg %p725_p12 }
  0x18   : > { %p732_p2 = por %p731_p1, %p730_p0 }
  0x1a   : > { %p733_p3 = pnand %p732_p2, %p726_p13 }
  0x1c   : > { %736 = shalt.err (!%p733_p3)
}
  0x1d   : > { %s822_s8 = smov 128   ;;  %s823_s9 = smov 8  }
  0x1e   : > { %643 = dma.hbm_to_vmem [thread:$0]  (!%p904_p9), %s152_s27, 256, %s154_s29, %s142_s3, %s822_s8, %s822_s8, %s823_s9  }
  0x1f   : > { %p629_p4 = scmp.ge.s32.totalorder %s819_s14, 1  ;;  %p185_p5 = scmp.lt.s32.totalorder %s819_s14, 3 }
  0x20   : > { %s627_s15 = sshll.u32 %s895_s22, 6  ;;  %s628_s18 = sshll.u32 %s815_s13, 7 }
  0x21   : > { %p922_p6 = pnand %p629_p4, %p185_p5  ;;  %s167_s19 = scalar_lea.vmem [#allocation6], %s627_s15 }
  0x22   : > { %s177_s23 = sshll.u32 %s167_s19, 4  ;;  %s176_s26 = scalar_lea.hbm %s1053_s1, %s628_s18  ;;  %s178_s23 = int_to_ptr.vmem [resolvable:$true] %s177_s23 }
  0x23   : > { %s164_s28 = scalar_lea.sflag [#allocation7], %s895_s22  ;;  %s750_s4 = scalar_lea.vmem %s178_s23, 1024 }
  0x24   : > { %p751_p8 = scmp.ne.s32.totalorder %s178_s23, %s750_s4  ;;  %s824_s27 = smov [#allocation6]  }
  0x25   : > { %s755_s29 = sshll.u32 %s824_s27, 4  ;;  %s756_s29 = int_to_ptr.vmem [resolvable:$false] %s755_s29 }
  0x26   : > { %p753_p11 = pnand %p751_p8, %p711_p10  ;;  %s757_s3 = scalar_lea.vmem %s756_s29, 2048 }
  0x27   : > { %p758_p13 = scmp.lt.s32.totalorder %s178_s23, %s756_s29  ;;  %p759_p0 = scmp.lt.s32.totalorder %s757_s3, %s750_s4 }
  0x28   : > { %p754_p12 = pneg %p753_p11 }
  0x29   : > { %p760_p1 = por %p759_p0, %p758_p13 }
  0x2b   : > { %p761_p2 = pnand %p760_p1, %p754_p12 }
  0x2d   : > { %764 = shalt.err (!%p761_p2)
}
  0x2e   : > { %s825_s5 = smov 256   ;;  %189 = sbr.rel (%p922_p6) target bundleno = 390 (0x186), region = 28 }
  0x2f   : > { %646 = dma.hbm_to_vmem [thread:$0]  (!%p904_p9), %s176_s26, 1024, %s178_s23, %s164_s28, %s825_s5, %s822_s8, %s823_s9  }
  0x30   : > { %s191_s22 = sand.u32 (!%p922_p6), 1, %s803_s10  }
  0x31   : > { %s630_s6 = sshll.u32 (!%p922_p6), %s191_s22, 4  ;;  %s192_s7 = scalar_lea.sflag (!%p922_p6), [#allocation5], %s191_s22 }
  0x32   : > { %s941_s15 = scalar_lea.vmem (!%p922_p6), [#allocation4], %s630_s6 }
  0x33   : > { %790 = dma.done.wait (%p886_p7), %s192_s7, 256  }
  0x34   : > { %792 = vsyncadd (%p886_p7), %s192_s7, 4294967040  ;;  %s631_s30 = sshll.u32 %s191_s22, 6  ;;  %s201_s18 = scalar_lea.sflag [#allocation7], %s191_s22 }
  0x35   : > { %s204_s19 = scalar_lea.vmem [#allocation6], %s631_s30 }
  0x36   : > { %794 = dma.done.wait (%p886_p7), %s201_s18, 1024  }
  0x37   : > { %796 = vsyncadd (%p886_p7), %s201_s18, 4294966272  ;;  %vm245_vm0 = vcmask 130048   ;;  %v826_v0 = vmov 0.0   ;;  %v248_v1 = vld [vmem:[%s204_s19] sm:$0xff]  ;;  %v249_v2 = vld [vmem:[%s204_s19 + $0x8] sm:$0xff]  ;;  %vm322_vm1 = vcmask 1041409  }
  0x38   : > { %246 = vst.msk [vmem:[#allocation2] sm:$0xff] %vm245_vm0, %v826_v0  ;;  %247 = vst.msk [vmem:[#allocation3] sm:$0xff] %vm245_vm0, %v826_v0  ;;  %v953_v3 = vld [vmem:[%s204_s19 + $0x10] sm:$0xff]  ;;  %v955_v4 = vld [vmem:[%s204_s19 + $0x18] sm:$0xff]  ;;  %v258_v7 = vsel %vm245_vm0, %v248_v1, 0.0  ;;  %v265_v8 = vsel %vm245_vm0, %v249_v2, 0.0  ;;  %v965_v10 = vmul.f32 %v248_v1, %v248_v1  ;;  %v971_v16 = vmul.f32 %v249_v2, %v249_v2 }
  0x39   : > { %v957_v5 = vld [vmem:[%s204_s19 + $0x20] sm:$0xff]  ;;  %v959_v6 = vld [vmem:[%s204_s19 + $0x28] sm:$0xff]  ;;  %v272_v9 = vsel %vm245_vm0, %v953_v3, 0.0  ;;  %v967_v11 = vld [vmem:[%s204_s19 + $0x30] sm:$0xff]  ;;  %v259_v13 = vrot.slane %v258_v7, 4  ;;  %v266_v14 = vrot.slane %v265_v8, 4  ;;  %v342_v63 = vmul.f32 %v953_v3, %v953_v3 }
  0x3a   : > { %v969_v12 = vld [vmem:[%s204_s19 + $0x38] sm:$0xff]  ;;  %v273_v15 = vrot.slane %v272_v9, 4  ;;  %v279_v17 = vsel %vm245_vm0, %v955_v4, 0.0  ;;  %v286_v18 = vsel %vm245_vm0, %v957_v5, 0.0  ;;  %v293_v19 = vsel %vm245_vm0, %v959_v6, 0.0  ;;  %s827_s20 = smov 120  }
  0x3b   : > { %v300_v20 = vsel %vm245_vm0, %v967_v11, 0.0  ;;  %v260_v21 = vadd.f32 %v259_v13, %v258_v7  ;;  %v267_v22 = vadd.f32 %v266_v14, %v265_v8  ;;  %v280_v24 = vrot.slane %v279_v17, 4  ;;  %p234_p7 = scmp.lt.s32.totalorder %s811_s12, 1 }
  0x3c   : > { %v274_v23 = vadd.f32 %v273_v15, %v272_v9  ;;  %v287_v25 = vrot.slane %v286_v18, 4  ;;  %v294_v26 = vrot.slane %v293_v19, 4  ;;  %v301_v27 = vrot.slane %v300_v20, 4 }
  0x3d   : > { %v307_v28 = vsel %vm245_vm0, %v969_v12, 0.0  ;;  %vm324_vm2 = vcmask 1042434   ;;  %v261_v29 = vrot.slane %v260_v21, 2  ;;  %v268_v30 = vrot.slane %v267_v22, 2  ;;  %s1067_s12 = smov (!%p234_p7, %s811_s12), 1 }
  0x3e   : > { %v275_v31 = vrot.slane %v274_v23, 2  ;;  %v281_v32 = vadd.f32 %v280_v24, %v279_v17  ;;  %vm326_vm3 = vcmask 1043459   ;;  %v288_v33 = vadd.f32 %v287_v25, %v286_v18  ;;  %s632_s8 = sshll.u32 %s1067_s12, 3 }
  0x3f   : > { %v295_v34 = vadd.f32 %v294_v26, %v293_v19  ;;  %v302_v35 = vadd.f32 %v301_v27, %v300_v20  ;;  %v308_v36 = vrot.slane %v307_v28, 4  ;;  %vm328_vm4 = vcmask 1044484   ;;  %s240_s23 = scalar_lea.vmem %s1054_s2, %s632_s8 }
  0x40   : > { %v262_v37 = vadd.f32 %v261_v29, %v260_v21  ;;  %v269_v38 = vadd.f32 %v268_v30, %v267_v22  ;;  %v276_v39 = vadd.f32 %v275_v31, %v274_v23  ;;  %v282_v40 = vrot.slane %v281_v32, 2  ;;  %v256_v21 = vld [vmem:[#allocation2] sm:$0xff] }
  0x41   : > { %vm330_vm5 = vcmask 1045509   ;;  %v289_v41 = vrot.slane %v288_v33, 2  ;;  %v296_v42 = vrot.slane %v295_v34, 2  ;;  %v303_v43 = vrot.slane %v302_v35, 2 }
  0x42   : > { %v309_v44 = vadd.f32 %v308_v36, %v307_v28  ;;  %vm332_vm6 = vcmask 1046534   ;;  %v263_v45 = vrot.slane %v262_v37, 1  ;;  %v270_v46 = vrot.slane %v269_v38, 1 }
  0x43   : > { %v277_v47 = vrot.slane %v276_v39, 1  ;;  %v283_v48 = vadd.f32 %v282_v40, %v281_v32  ;;  %vm334_vm7 = vcmask 1047559   ;;  %v290_v49 = vadd.f32 %v289_v41, %v288_v33 }
  0x44   : > { %v297_v50 = vadd.f32 %v296_v42, %v295_v34  ;;  %v304_v51 = vadd.f32 %v303_v43, %v302_v35  ;;  %v310_v52 = vrot.slane %v309_v44, 2  ;;  %v264_v53 = vadd.f32 %v263_v45, %v262_v37 }
  0x45   : > { %v271_v54 = vadd.f32 %v270_v46, %v269_v38  ;;  %v278_v55 = vadd.f32 %v277_v47, %v276_v39  ;;  %v284_v56 = vrot.slane %v283_v48, 1  ;;  %v291_v57 = vrot.slane %v290_v49, 1 }
  0x46   : > { %v298_v58 = vrot.slane %v297_v50, 1  ;;  %v305_v59 = vrot.slane %v304_v51, 1  ;;  %v311_v60 = vadd.f32 %v310_v52, %v309_v44  ;;  %v343_v0 = vmul.f32 %v955_v4, %v955_v4 }
  0x47   : > { %v285_v61 = vadd.f32 %v284_v56, %v283_v48  ;;  %v323_v62 = vsel %vm322_vm1, %v271_v54, %v264_v53  ;;  %v292_v1 = vadd.f32 %v291_v57, %v290_v49  ;;  %v344_v13 = vmul.f32 %v957_v5, %v957_v5 }
  0x48   : > { %v299_v2 = vadd.f32 %v298_v58, %v297_v50  ;;  %v306_v7 = vadd.f32 %v305_v59, %v304_v51  ;;  %v312_v8 = vrot.slane %v311_v60, 1  ;;  %v325_v9 = vsel %vm324_vm2, %v278_v55, %v323_v62  ;;  %v425_v50 = vld [vmem:[%s941_s15] sm:$0xff] }
  0x49   : > { %v345_v14 = vmul.f32 %v959_v6, %v959_v6  ;;  %v346_v15 = vmul.f32 %v967_v11, %v967_v11  ;;  %v327_v3 = vsel %vm326_vm3, %v285_v61, %v325_v9  ;;  %v347_v4 = vmul.f32 %v969_v12, %v969_v12 }
  0x4a   : > { %v313_v17 = vadd.f32 %v312_v8, %v311_v60  ;;  %v348_v18 = vsel %vm245_vm0, %v965_v10, 0.0  ;;  %v329_v19 = vsel %vm328_vm4, %v292_v1, %v327_v3  ;;  %v355_v5 = vsel %vm245_vm0, %v971_v16, 0.0 }
  0x4b   : > { %v349_v20 = vrot.slane %v348_v18, 4  ;;  %v362_v6 = vsel %vm245_vm0, %v342_v63, 0.0  ;;  %v331_v11 = vsel %vm330_vm5, %v299_v2, %v329_v19  ;;  %v356_v22 = vrot.slane %v355_v5, 4  ;;  %v426_v63 = vld [vmem:[%s941_s15 + $0x8] sm:$0xff] }
  0x4c   : > { %v363_v23 = vrot.slane %v362_v6, 4  ;;  %v369_v24 = vsel %vm245_vm0, %v343_v0, 0.0  ;;  %vm429_vm8 = vcmask 64512   ;;  %v333_v12 = vsel %vm332_vm6, %v306_v7, %v331_v11 }
  0x4d   : > { %v350_v25 = vadd.f32 %v349_v20, %v348_v18  ;;  %v370_v10 = vrot.slane %v369_v24, 4  ;;  %v376_v26 = vsel %vm245_vm0, %v344_v13, 0.0  ;;  %v335_v27 = vsel %vm334_vm7, %v313_v17, %v333_v12 }
  0x4e   : > { %v357_v28 = vadd.f32 %v356_v22, %v355_v5  ;;  %v364_v16 = vadd.f32 %v363_v23, %v362_v6  ;;  %v377_v29 = vrot.slane %v376_v26, 4  ;;  %v337_v30 = vadd.f32 %v335_v27, %v256_v21  ;;  %v339_v23 = vld [vmem:[#allocation3] sm:$0xff] }
  0x4f   : > { %v351_v31 = vrot.slane %v350_v25, 2  ;;  %v371_v32 = vadd.f32 %v370_v10, %v369_v24  ;;  %v383_v33 = vsel %vm245_vm0, %v345_v14, 0.0  ;;  %v390_v40 = vsel %vm245_vm0, %v346_v15, 0.0 }
  0x50   : > { %v358_v34 = vrot.slane %v357_v28, 2  ;;  %v365_v35 = vrot.slane %v364_v16, 2  ;;  %v378_v36 = vadd.f32 %v377_v29, %v376_v26  ;;  %v384_v37 = vrot.slane %v383_v33, 4  ;;  %338 = vst.msk [vmem:[#allocation2] sm:$0xff] %vm245_vm0, %v337_v30 }
  0x51   : > { %v352_v38 = vadd.f32 %v351_v31, %v350_v25  ;;  %v372_v39 = vrot.slane %v371_v32, 2  ;;  %v397_v41 = vsel %vm245_vm0, %v347_v4, 0.0  ;;  %v391_v48 = vrot.slane %v390_v40, 4 }
  0x52   : > { %v359_v42 = vadd.f32 %v358_v34, %v357_v28  ;;  %v366_v43 = vadd.f32 %v365_v35, %v364_v16  ;;  %v379_v44 = vrot.slane %v378_v36, 2  ;;  %v385_v45 = vadd.f32 %v384_v37, %v383_v33 }
  0x53   : > { %v353_v46 = vrot.slane %v352_v38, 1  ;;  %v373_v47 = vadd.f32 %v372_v39, %v371_v32  ;;  %v398_v49 = vrot.slane %v397_v41, 4  ;;  %v392_v57 = vadd.f32 %v391_v48, %v390_v40 }
  0x54   : > { %v360_v51 = vrot.slane %v359_v42, 1  ;;  %v367_v52 = vrot.slane %v366_v43, 1  ;;  %v380_v53 = vadd.f32 %v379_v44, %v378_v36  ;;  %v386_v54 = vrot.slane %v385_v45, 2 }
  0x55   : > { %v354_v55 = vadd.f32 %v353_v46, %v352_v38  ;;  %v374_v56 = vrot.slane %v373_v47, 1  ;;  %v399_v58 = vadd.f32 %v398_v49, %v397_v41  ;;  %v393_v1 = vrot.slane %v392_v57, 2 }
  0x56   : > { %v361_v59 = vadd.f32 %v360_v51, %v359_v42  ;;  %v368_v60 = vadd.f32 %v367_v52, %v366_v43  ;;  %v381_v61 = vrot.slane %v380_v53, 1  ;;  %v387_v62 = vadd.f32 %v386_v54, %v385_v45 }
  0x57   : > { %v375_v0 = vadd.f32 %v374_v56, %v373_v47  ;;  %v400_v2 = vrot.slane %v399_v58, 2  ;;  %v430_v7 = vsel %vm429_vm8, %v425_v50, 0.0  ;;  %v427_v8 = vld [vmem:[#allocation2] sm:$0xff]  ;;  %v394_v15 = vadd.f32 %v393_v1, %v392_v57 }
  0x58   : > { %v382_v9 = vadd.f32 %v381_v61, %v380_v53  ;;  %v388_v13 = vrot.slane %v387_v62, 1  ;;  %v412_v14 = vsel %vm322_vm1, %v361_v59, %v354_v55  ;;  %431 = vadd.xlane.f32.xlu1 %v430_v7  ;;  %465 = vrot.lane.b32.xlu0 %v427_v8, %s827_s20  ;;  %v460_v4 = vsel %vm429_vm8, %v426_v63, 0.0 }
  0x59   : > { %v401_v17 = vadd.f32 %v400_v2, %v399_v58  ;;  %v413_v3 = vsel %vm324_vm2, %v368_v60, %v412_v14  ;;  %v395_v20 = vrot.slane %v394_v15, 1  ;;  %v434_v27 = vmul.f32 %v427_v8, %v425_v50 }
  0x5a   : > { %v389_v18 = vadd.f32 %v388_v13, %v387_v62  ;;  %v414_v19 = vsel %vm326_vm3, %v375_v0, %v413_v3  ;;  %vm498_vm10 = vcmask 7168   ;;  %vm500_vm12 = vcmask 15360  }
  0x5b   : > { %v402_v5 = vrot.slane %v401_v17, 1  ;;  %v415_v6 = vsel %vm328_vm4, %v382_v9, %v414_v19  ;;  %v396_v11 = vadd.f32 %v395_v20, %v394_v15  ;;  %v435_v28 = vsel %vm429_vm8, %v434_v27, 0.0 }
  0x5c   : > { %v416_v21 = vsel %vm330_vm5, %v389_v18, %v415_v6  ;;  %461 = vadd.xlane.f32.xlu1 %v460_v4  ;;  %vm502_vm13 = vcmask 23552   ;;  %vm504_vm15 = vcmask 31744  }
  0x5d   : > { %v403_v22 = vadd.f32 %v402_v5, %v401_v17  ;;  %v417_v24 = vsel %vm332_vm6, %v396_v11, %v416_v21 }
  0x5f   : > { %v418_v12 = vsel %vm334_vm7, %v403_v22, %v417_v24 }
  0x60   : > { %v420_v25 = vadd.f32 %v418_v12, %v339_v23 }
  0x62   : > { %421 = vst.msk [vmem:[#allocation3] sm:$0xff] %vm245_vm0, %v420_v25 }
  0x69   : > { %v428_v10 = vld [vmem:[#allocation3] sm:$0xff] }
  0x6a   : > { %473 = vrot.lane.b32.xlu0 %v428_v10, %s827_s20  ;;  %v438_v26 = vmul.f32 %v428_v10, %v425_v50 }
  0x6c   : > { %v439_v31 = vsel %vm429_vm8, %v438_v26, 0.0 }
  0x89   : > { %436 = vadd.xlane.f32.xlu0 %v435_v28 }
  0xca   : > { %v466_v16 = vpop.permute.xlu0 %465 }
  0xcb   : > { %v468_v29 = vmul.f32 %v466_v16, %v426_v63 }
  0xcd   : > { %v469_v30 = vsel %vm429_vm8, %v468_v29, 0.0 }
  0xce   : > { %470 = vadd.xlane.f32.xlu1 %v469_v30 }
  0xd2   : > { %440 = vadd.xlane.f32.xlu1 %v439_v31 }
  0xdc   : > { %v474_v32 = vpop.permute.xlu0 %473 }
  0xdd   : > { %v476_v33 = vmul.f32 %v474_v32, %v426_v63 }
  0xdf   : > { %v477_v34 = vsel %vm429_vm8, %v476_v33, 0.0 }
  0xe0   : > { %478 = vadd.xlane.f32.xlu1 %v477_v34 }
  0xe1   : > { %v432_v35 = vpop.xlane.xlu1 %431 }
  0xe2   : > { %v433_v36 = vadd.f32 1e-06, %v432_v35 }
  0xe4   : > { %701 = vrcp.f32 %v433_v36 }
  0xe5   : > { %v462_v37 = vpop.xlane.xlu1 %461 }
  0xe6   : > { %v463_v38 = vadd.f32 1e-06, %v462_v37 }
  0xe8   : > { %703 = vrcp.f32 %v463_v38 }
  0xf1   : > { %v702_v39 = vpop.eup %701 }
  0xf5   : > { %v704_v47 = vpop.eup %703 }
 0x112   : > { %v437_v40 = vpop.xlane.xlu0 %436 }
 0x113   : > { %v443_v41 = vmul.f32 %v702_v39, %v437_v40 }
 0x115   : > { %v444_v42 = vmul.f32 2.0, %v443_v41  ;;  %v447_v43 = vmul.f32 8.0, %v443_v41 }
 0x117   : > { %v445_v45 = vmul.f32 %v444_v42, %v437_v40  ;;  %v448_v46 = vmul.f32 %v447_v43, %v443_v41 }
 0x119   : > { %v449_v50 = vmul.f32 %v448_v46, %v432_v35 }
 0x157   : > { %v471_v44 = vpop.xlane.xlu1 %470 }
 0x158   : > { %v481_v51 = vmul.f32 %v704_v47, %v471_v44 }
 0x15a   : > { %v485_v54 = vmul.f32 8.0, %v481_v51  ;;  %v482_v55 = vmul.f32 2.0, %v481_v51  ;;  %v499_v17 = vsel %vm498_vm10, %v443_v41, %v481_v51 }
 0x15b   : > { %v441_v48 = vpop.xlane.xlu1 %440 }
 0x15c   : > { %v446_v49 = vsub.f32 %v441_v48, %v445_v45  ;;  %v486_v57 = vmul.f32 %v485_v54, %v481_v51  ;;  %v483_v58 = vmul.f32 %v482_v55, %v471_v44 }
 0x15e   : > { %v450_v52 = vadd.f32 %v449_v50, %v446_v49  ;;  %v487_v60 = vmul.f32 %v486_v57, %v462_v37 }
 0x160   : > { %v451_v53 = vmax.f32 %v450_v52, 0.0 }
 0x162   : > { %v452_v56 = vmul.f32 %v702_v39, %v451_v53 }
 0x164   : > { %705 = vrsqrt.f32 %v452_v56  ;;  %vm455_vm9 = vcmp.eq.f32.partialorder %v452_v56, inf  ;;  %v458_v8 = vand.u32 2147483648, %v452_v56  ;;  %vm457_vm11 = vcmp.eq.f32.partialorder %v452_v56, 0.0 }
 0x169   : > { %v479_v59 = vpop.xlane.xlu1 %478 }
 0x16a   : > { %v484_v61 = vsub.f32 %v479_v59, %v483_v58 }
 0x16c   : > { %v488_v62 = vadd.f32 %v487_v60, %v484_v61 }
 0x16e   : > { %v489_v63 = vmax.f32 %v488_v62, 0.0 }
 0x170   : > { %v490_v0 = vmul.f32 %v704_v47, %v489_v63 }
 0x171   : > { %v706_v1 = vpop.eup %705 }
 0x172   : > { %707 = vrsqrt.f32 %v490_v0  ;;  %v454_v2 = vmul.f32 %v706_v1, %v452_v56  ;;  %vm493_vm14 = vcmp.eq.f32.partialorder %v490_v0, inf  ;;  %v496_v15 = vand.u32 2147483648, %v490_v0 }
 0x173   : > { %vm495_vm0 = vcmp.eq.f32.partialorder %v490_v0, 0.0 }
 0x174   : > { %v456_v7 = vsel %vm455_vm9, %v452_v56, %v454_v2 }
 0x175   : > { %v459_v13 = vsel %vm457_vm11, %v458_v8, %v456_v7 }
 0x176   : > { %v501_v4 = vsel %vm500_vm12, %v499_v17, %v459_v13 }
 0x17f   : > { %v708_v9 = vpop.eup %707 }
 0x180   : > { %v492_v14 = vmul.f32 %v708_v9, %v490_v0 }
 0x182   : > { %v494_v3 = vsel %vm493_vm14, %v490_v0, %v492_v14 }
 0x183   : > { %v497_v18 = vsel %vm495_vm0, %v496_v15, %v494_v3 }
 0x184   : > { %v503_v19 = vsel %vm502_vm13, %v501_v4, %v497_v18 }
 0x185   : > { %505 = vst.msk [vmem:[%s240_s23] sm:$0xff] %vm504_vm15, %v503_v19 }
 0x186 PF: > { %s18_s14 = sadd.s32 1, %s819_s14   ;;  %s1059_s9 = smov %s803_s10 }
 0x187   : > { %p15_p9 = scmp.ge.s32.totalorder %s18_s14, 4   ;;  %s1060_s10 = smov %s807_s11 }
 0x188   : > { %s1061_s11 = smov %s892_s21  ;;  %s1062_s12 = smov %s815_s13 }
 0x189   : > { %s1063_s13 = smov %s1065_s16  ;;  %17 = sbr.rel (!%p15_p9) target bundleno = 6 (0x6), region = 89 }
 0x18e   :  { %531 = vsyncpa [#allocation5], 1 }
 0x18f   :  { %533 = vsyncpa [#allocation5 + $0x1], 1 }
 0x190   :  { %534 = vsyncpa [#allocation7], 1 }
 0x191   :  { %536 = vsyncpa [#allocation7 + $0x1], 1 }

</bundles_post_ra>
